<compile_context>
chip_gen: v6e
topology: v6e:2x2x1
jax: 0.10.0
libtpu: 0.0.40
codegen_flags: <defaults>
</compile_context>

<pallas_src>
import jax
import jax.numpy as jnp
from jax.experimental import pallas as pl
from jax.experimental.pallas import tpu as pltpu


# ---- Config (mirrors the global `Config` referenced by the PyTorch module) ----
class Config:
    embed_dropout = 0.1          # forward evaluated in eval mode -> dropout is identity
    conv_filter_set_num = 2
    conv_kernel_size = [3, 4]    # one odd, one even kernel (exercises the `tmp[:, :, 1:]` crop)
    sent_repr_dim = 16
    nonlinear = "relu"           # Config.nonlinear assumed to be F.relu


def _make_fused_kernel(TB, L, K_span, Ctot, need_kmaxavg):
    """Per-batch-tile kernel: fused Conv1d (both filter sets) + ReLU + top-k pool."""

    def kernel(x_ref, w_ref, b_ref, out_ref):
        x = x_ref[...]                                    # (TB, L_pad, E) bf16
        E = x.shape[-1]
        # Contraction slab: column block s holds x shifted by s along the length
        # axis, so the conv over all taps of both filter sets becomes ONE matmul.
        slab = jnp.concatenate([x[:, s:s + L, :] for s in range(K_span)], axis=-1)
        slab = slab.reshape(TB * L, K_span * E)           # (TB*L, K_span*E)

        # Single MXU pass (bf16 inputs, f32 accumulation).
        acc = jnp.dot(slab, w_ref[...], preferred_element_type=jnp.float32)  # (TB*L, Ctot)
        acc = jnp.maximum(acc + b_ref[...], 0.0)          # bias + ReLU (Config.nonlinear)
        acc = acc.reshape(TB, L, Ctot)

        if need_kmaxavg:
            # torch.topk(k=2, sorted=False) over length, then mean (assumes L >= 2;
            # torch itself would error for L < 2).
            m1 = jnp.max(acc, axis=1, keepdims=True)                        # (TB,1,Ctot)
            idx = jax.lax.broadcasted_iota(jnp.int32, acc.shape, 1)
            first = jnp.min(jnp.where(acc == m1, idx, L), axis=1, keepdims=True)
            acc2 = jnp.where(idx == first, -jnp.inf, acc)                   # drop one max occ.
            m2 = jnp.max(acc2, axis=1, keepdims=True)                       # (TB,1,Ctot)
            pooled = ((m1 + m2) * 0.5).reshape(TB, Ctot)
        else:
            # torch.topk(k=1) over length == max over length.
            pooled = jnp.max(acc, axis=1)                                   # (TB, Ctot)

        out_ref[...] = pooled.astype(out_ref.dtype)

    return kernel


def _build_fused_weights(conv_ws, conv_bs, kernel_sizes, padL_max, K_span):
    """Pack per-filter-set torch Conv1d weights (C,E,k) into one (K_span*E, Ctot) matrix."""
    C, E = conv_ws[0].shape[0], conv_ws[0].shape[1]
    Ctot = len(conv_ws) * C
    w_fused = jnp.zeros((K_span, E, Ctot), jnp.float32)
    for i, (w, k) in enumerate(zip(conv_ws, kernel_sizes)):
        off = padL_max - (k - 1) // 2                     # tap offset within the shared pad
        w_taps = jnp.transpose(w, (2, 1, 0))              # (k, E, C)
        w_fused = w_fused.at[off:off + k, :, i * C:(i + 1) * C].set(w_taps)
    b_fused = jnp.concatenate(conv_bs, axis=0).reshape(1, Ctot)
    return w_fused.reshape(K_span * E, Ctot), b_fused


def cnn_encoder_forward(params, input_ids, need_kmaxavg=False, batch_tile=16):
    """Pallas-backed equivalent of CNNencoder.forward (eval mode)."""
    # nn.Embedding lookup (frozen weights); nn.Dropout is identity in eval mode.
    # TODO(synk): at production B/L, fuse this gather into the kernel via
    # PrefetchScalarGridSpec(input_ids) to avoid materializing (B, L, E) in HBM.
    emb = jnp.take(params["embed"], input_ids, axis=0).astype(jnp.float32)  # (B, L, E)
    B, L, E = emb.shape
    C = Config.sent_repr_dim
    ks = list(Config.conv_kernel_size[:Config.conv_filter_set_num])

    # padding=k//2 on both sides; for even k the first output is cropped, which is
    # equivalent to valid conv with (left, right) padding ((k-1)//2, k//2).
    padL_max = max((k - 1) // 2 for k in ks)
    padR_max = max(k // 2 for k in ks)
    K_span = padL_max + padR_max + 1
    L_pad = L + padL_max + padR_max
    Ctot = len(ks) * C

    # Batch tile: full batch in one grid step when small, else tiles of `batch_tile`
    # (multiple of 8 keeps the output block sublane-aligned).  At production batch
    # sizes (B > batch_tile) this yields >= 2 parallel grid steps so both v7x
    # TensorCores get work; VMEM per tile is tiny so no vmem_limit override needed.
    TB = B if B <= batch_tile else batch_tile
    nB = pl.cdiv(B, TB)
    B_pad = nB * TB

    # Single shared zero pad for both filter sets (and batch padding if needed).
    x_pad = jnp.pad(emb, ((0, B_pad - B), (padL_max, padR_max), (0, 0)))
    x_bf16 = x_pad.astype(jnp.bfloat16)

    w_fused, b_fused = _build_fused_weights(params["conv_w"], params["conv_b"],
                                            ks, padL_max, K_span)
    w_bf16 = w_fused.astype(jnp.bfloat16)

    kernel = _make_fused_kernel(TB, L, K_span, Ctot, need_kmaxavg)
    out = pl.pallas_call(
        kernel,
        out_shape=jax.ShapeDtypeStruct((B_pad, Ctot), jnp.float32),
        grid=(nB,),
        in_specs=[
            pl.BlockSpec((TB, L_pad, E), lambda i: (i, 0, 0)),
            pl.BlockSpec((K_span * E, Ctot), lambda i: (0, 0)),
            pl.BlockSpec((1, Ctot), lambda i: (0, 0)),
        ],
        out_specs=pl.BlockSpec((TB, Ctot), lambda i: (i, 0)),
        compiler_params=pltpu.CompilerParams(dimension_semantics=("parallel",)),
    )(x_bf16, w_bf16, b_fused)
    return out[:B]                                        # (B, conv_filter_set_num * C)


def reference_forward(params, input_ids, need_kmaxavg=False):
    """Pure-JAX f32 reference (same math, no Pallas) for the correctness check."""
    emb = jnp.take(params["embed"], input_ids, axis=0).astype(jnp.float32)
    B, L, E = emb.shape
    outs = []
    for i in range(Config.conv_filter_set_num):
        k = Config.conv_kernel_size[i]
        padL, padR = (k - 1) // 2, k // 2
        xp = jnp.pad(emb, ((0, 0), (padL, padR), (0, 0)))
        w = jnp.transpose(params["conv_w"][i], (2, 1, 0))                 # (k, E, C)
        acc = sum(jnp.einsum("ble,ec->blc", xp[:, t:t + L, :], w[t]) for t in range(k))
        acc = jax.nn.relu(acc + params["conv_b"][i][None, None, :])       # (B, L, C)
        if need_kmaxavg:
            top2 = jax.lax.top_k(jnp.swapaxes(acc, 1, 2), 2)[0]           # (B, C, 2)
            pooled = jnp.mean(top2, axis=2)
        else:
            pooled = jnp.max(acc, axis=1)
        outs.append(pooled)
    return jnp.concatenate(outs, axis=1)


def init_params(key, vocab, embed_dim, sent_repr_dim):
    """Deterministic synthetic parameters matching CNNencoder.__init__/_init_weight."""
    k_embed, *k_convs = jax.random.split(key, 1 + Config.conv_filter_set_num)
    params = {
        "embed": jax.random.normal(k_embed, (vocab, embed_dim), jnp.float32),  # we_tensor
        "conv_w": [],
        "conv_b": [],
    }
    for i in range(Config.conv_filter_set_num):
        k = Config.conv_kernel_size[i]
        w = jax.random.uniform(k_convs[i], (sent_repr_dim, embed_dim, k),
                               jnp.float32, minval=-0.02, maxval=0.02)
        params["conv_w"].append(w)
        params["conv_b"].append(jnp.zeros((sent_repr_dim,), jnp.float32))       # bias.fill_(0)
    return params


if __name__ == "__main__":
    B, L = 2, 8          # batch, sequence length
    vocab, E = 50, 32    # we_tensor shape
    C = Config.sent_repr_dim

    key = jax.random.PRNGKey(0)
    k_params, k_ids = jax.random.split(key)
    params = init_params(k_params, vocab, E, C)
    input_ids = jax.random.randint(k_ids, (B, L), 0, vocab, dtype=jnp.int32)

    # need_kmaxavg=False (constructor default): topk(k=1) max pooling.
    out = jax.block_until_ready(cnn_encoder_forward(params, input_ids, need_kmaxavg=False))
    assert out.shape == (B, Config.conv_filter_set_num * C), out.shape
    ref = reference_forward(params, input_ids, need_kmaxavg=False)
    # bf16 matmul inputs (f32 accumulation) vs f32 reference -> loosened tolerance.
    assert jnp.allclose(out, ref, atol=1e-2, rtol=1e-2), float(jnp.max(jnp.abs(out - ref)))

    # Also exercise the need_kmaxavg=True (top-2 mean) path.
    out2 = jax.block_until_ready(cnn_encoder_forward(params, input_ids, need_kmaxavg=True))
    ref2 = reference_forward(params, input_ids, need_kmaxavg=True)
    assert jnp.allclose(out2, ref2, atol=1e-2, rtol=1e-2), float(jnp.max(jnp.abs(out2 - ref2)))

    print("KERNEL_OK")
</pallas_src>

<mosaic_0001>
module attributes {stable_mosaic.version = 11 : i64} {
  func.func @kernel(%arg0: i32, %arg1: memref<2x11x32xbf16, #tpu.memory_space<vmem>>, %arg2: memref<128x32xbf16, #tpu.memory_space<vmem>>, %arg3: memref<1x32xf32, #tpu.memory_space<vmem>>, %arg4: memref<2x32xf32, #tpu.memory_space<vmem>>) attributes {dimension_semantics = [#tpu.dimension_semantics<parallel>], iteration_bounds = array<i64: 1>, scalar_prefetch = 0 : i64, scratch_operands = 0 : i64, tpu.core_type = #tpu.core_type<tc>, window_params = [{transform_indices = @transform_0, window_bounds = array<i64: 2, 11, 32>}, {pipeline_mode = #tpu.pipeline_mode<synchronous>, transform_indices = @transform_1, window_bounds = array<i64: 128, 32>}, {pipeline_mode = #tpu.pipeline_mode<synchronous>, transform_indices = @transform_2, window_bounds = array<i64: 1, 32>}, {transform_indices = @transform_3, window_bounds = array<i64: 2, 32>}]} {
    %c0 = arith.constant 0 : index
    %c0_0 = arith.constant 0 : index
    %c0_1 = arith.constant 0 : index
    %0 = vector.load %arg1[%c0, %c0_0, %c0_1] : memref<2x11x32xbf16, #tpu.memory_space<vmem>>, vector<2x11x32xbf16>
    %1 = vector.extract_strided_slice %0 {offsets = [0, 0, 0], sizes = [2, 8, 32], strides = [1, 1, 1]} : vector<2x11x32xbf16> to vector<2x8x32xbf16>
    %2 = vector.extract_strided_slice %0 {offsets = [0, 1, 0], sizes = [2, 8, 32], strides = [1, 1, 1]} : vector<2x11x32xbf16> to vector<2x8x32xbf16>
    %3 = vector.extract_strided_slice %0 {offsets = [0, 2, 0], sizes = [2, 8, 32], strides = [1, 1, 1]} : vector<2x11x32xbf16> to vector<2x8x32xbf16>
    %4 = vector.extract_strided_slice %0 {offsets = [0, 3, 0], sizes = [2, 8, 32], strides = [1, 1, 1]} : vector<2x11x32xbf16> to vector<2x8x32xbf16>
    %5 = tpu.concatenate %1, %2, %3, %4 in 2 : vector<2x8x32xbf16>, vector<2x8x32xbf16>, vector<2x8x32xbf16>, vector<2x8x32xbf16> -> vector<2x8x128xbf16>
    %6 = vector.shape_cast %5 : vector<2x8x128xbf16> to vector<16x128xbf16>
    %c0_2 = arith.constant 0 : index
    %c0_3 = arith.constant 0 : index
    %7 = vector.load %arg2[%c0_2, %c0_3] : memref<128x32xbf16, #tpu.memory_space<vmem>>, vector<128x32xbf16>
    %cst = arith.constant dense<0.000000e+00> : vector<16x32xf32>
    %8 = tpu.matmul %6, %7, %cst {dimension_numbers = #tpu.dot_dimension_numbers<[1], [0], [0], [1], [0, 0, 1, 1], [], []>} : vector<16x128xbf16>, vector<128x32xbf16>, vector<16x32xf32> -> vector<16x32xf32>
    %c0_4 = arith.constant 0 : index
    %c0_5 = arith.constant 0 : index
    %9 = vector.load %arg3[%c0_4, %c0_5] : memref<1x32xf32, #tpu.memory_space<vmem>>, vector<1x32xf32>
    %10 = vector.broadcast %9 : vector<1x32xf32> to vector<16x32xf32>
    %11 = arith.addf %8, %10 : vector<16x32xf32>
    %cst_6 = arith.constant 0.000000e+00 : f32
    %12 = vector.broadcast %cst_6 : f32 to vector<16x32xf32>
    %13 = arith.maximumf %11, %12 : vector<16x32xf32>
    %14 = vector.shape_cast %13 : vector<16x32xf32> to vector<2x8x32xf32>
    %cst_7 = arith.constant dense<0xFF800000> : vector<2x32xf32>
    %15 = vector.multi_reduction <maximumf>, %14, %cst_7 [1] : vector<2x8x32xf32> to vector<2x32xf32>
    %c0_8 = arith.constant 0 : index
    %c0_9 = arith.constant 0 : index
    %16 = vector.load %arg4[%c0_8, %c0_9] : memref<2x32xf32, #tpu.memory_space<vmem>>, vector<2x32xf32>
    tpu.vector_store %arg4[%c0_8, %c0_9], %15 {strides = array<i32>} : memref<2x32xf32, #tpu.memory_space<vmem>>, vector<2x32xf32>,
    return
  }
  func.func @transform_0(%arg0: i32) -> (i32, i32, i32) {
    %c0_i32 = arith.constant 0 : i32
    %c0_i32_0 = arith.constant 0 : i32
    %c0_i32_1 = arith.constant 0 : i32
    return %arg0, %c0_i32, %c0_i32_0 : i32, i32, i32
  }
  func.func @transform_1(%arg0: i32) -> (i32, i32) {
    %c0_i32 = arith.constant 0 : i32
    %c0_i32_0 = arith.constant 0 : i32
    %c0_i32_1 = arith.constant 0 : i32
    return %c0_i32, %c0_i32_0 : i32, i32
  }
  func.func @transform_2(%arg0: i32) -> (i32, i32) {
    %c0_i32 = arith.constant 0 : i32
    %c0_i32_0 = arith.constant 0 : i32
    %c0_i32_1 = arith.constant 0 : i32
    return %c0_i32, %c0_i32_0 : i32, i32
  }
  func.func @transform_3(%arg0: i32) -> (i32, i32) {
    %c0_i32 = arith.constant 0 : i32
    %c0_i32_0 = arith.constant 0 : i32
    return %arg0, %c0_i32 : i32, i32
  }
}

</mosaic_0001>

<bundles_post_ra>
// kernel: tpu_custom_call.1
= control target key start
LH: loop header
LB: loop body
LE: loop exit
PB: predicated region body
PF: predicated region fallthrough
CT: control target
= control target key end

     0   :  { %v315_v6 = vmov 0.0   ;;  %s316_s24 = smov 64   ;;  %s317_s26 = smov 32   ;;  %vm318_vm0 = vmmov 0   ;;  %s395_s0 = inlined_call_operand.vmem [shape: bf16[2,11,32], index: 0, kind: input, shape index: {}]   ;;  %s396_s1 = inlined_call_operand.vmem [shape: bf16[128,32], index: 1, kind: input, shape index: {}]   ;;  %s397_s2 = inlined_call_operand.vmem [shape: f32[1,32], index: 2, kind: input, shape index: {}]   ;;  %s398_s3 = inlined_call_operand.hbm [shape: f32[2,32], index: 3, kind: output, shape index: {}]  }
   0x1   :  { %v344_v0 = vld [vmem:[%s395_s0] sm:$0xf]  ;;  %v17_v1 = vld [vmem:[%s395_s0 + $0x4] sm:$0x3]  ;;  %v353_v3 = vld [vmem:[%s395_s0 + $0x8] sm:$0xf]  ;;  %257 = vmatprep.subr.bf16.mxu0 %v315_v6  ;;  %273 = vmatprep.mubr.msk.bf16.mxu0 %vm318_vm0, %v315_v6 }
   0x2   :  { %v236_v2 = vcombine.low %v344_v0, %v17_v1  ;;  %v19_v4 = vld [vmem:[%s395_s0 + $0xc] sm:$0x3]  ;;  %v285_v7 = vld [vmem:[%s396_s1 + $0x38] sm:$0xff]   ;;  %v286_v13 = vld [vmem:[%s396_s1 + $0x30] sm:$0xff]  }
   0x3   :  { %v237_v5 = vcombine.low %v353_v3, %v19_v4  ;;  %258 = vmatpush3.bf16.msra.mxu0 %v285_v7  ;;  %v287_v20 = vld [vmem:[%s396_s1 + $0x28] sm:$0xff]   ;;  %v288_v25 = vld [vmem:[%s396_s1 + $0x20] sm:$0xff]  }
   0x4   :  { %v48_v8 = vrot.slane %v236_v2, 1  ;;  %v31_v9 = vshrl.u32 %v236_v2, 16  ;;  %v33_v10 = vshll.u32 %v236_v2, 16  ;;  %259 = vmatprep.subr.bf16.mxu0 %v315_v6 }
   0x5   :  { %v38_v11 = vshrl.u32 %v237_v5, 16  ;;  %v40_v12 = vshll.u32 %v237_v5, 16  ;;  %v49_v15 = vrot.slane %v237_v5, 1 }
   0x6   :  { %50 = vrot.lane.b32.xlu1 %v48_v8, %s316_s24  ;;  %v35_v14 = vrot.slane %v33_v10, 1  ;;  %v54_v16 = vrot.slane %v31_v9, 1  ;;  %v55_v24 = vrot.slane %v33_v10, 2 }
   0x7   :  { %v42_v17 = vrot.slane %v40_v12, 1  ;;  %v57_v18 = vrot.slane %v38_v11, 1  ;;  %v58_v19 = vrot.slane %v40_v12, 2  ;;  %260 = vmatpush3.bf16.msra.mxu0 %v286_v13 }
   0x8   :  { %v36_v21 = vor.u32 %v35_v14, %v31_v9  ;;  %261 = vmatprep.subr.bf16.mxu0 %v315_v6 }
   0x9   :  { %v43_v22 = vor.u32 %v42_v17, %v38_v11  ;;  %v59_v23 = vor.u32 %v58_v19, %v57_v18 }
   0xa   :  { %44 = vrot.lane.b32.xlu0 %v36_v21, %s317_s26  ;;  %52 = vrot.lane.b32.xlu1 %v49_v15, %s316_s24 }
   0xb   :  { %262 = vmatpush3.bf16.msra.mxu0 %v287_v20 }
   0xc   :  { %8 = vsyncpa [#allocation3], 0  ;;  %s319_s29 = smov 96   ;;  %v56_v26 = vor.u32 %v55_v24, %v54_v16  ;;  %263 = vmatprep.subr.bf16.mxu0 %v315_v6  ;;  %v289_v27 = vld [vmem:[%s396_s1 + $0x18] sm:$0xff]   ;;  %v290_v28 = vld [vmem:[%s396_s1 + $0x10] sm:$0xff]   ;;  %vm64_vm1 = vcmask 261120  }
   0xd   :  { %v291_v29 = vld [vmem:[%s396_s1 + $0x8] sm:$0xff]   ;;  %v292_v30 = vld [vmem:[%s396_s1] sm:$0xff]   ;;  %vm71_vm2 = vcmask 523264   ;;  %vm76_vm3 = vcmask 785408   ;;  %vm217_vm4 = vcmask 1041409   ;;  %vm220_vm5 = vcmask 254976  }
   0xe   :  { %46 = vrot.lane.b32.xlu0 %v43_v22, %s317_s26  ;;  %62 = vrot.lane.b32.xlu1 %v59_v23, %s319_s29  ;;  %v238_v44 = vld [vmem:[%s397_s2] ss:$0 sm:$0xff]  ;;  %s320_s2 = smov [#allocation2]  }
   0xf   :  { %264 = vmatpush3.bf16.msra.mxu0 %v288_v25  ;;  %s228_s12 = sshll.u32 %s320_s2, 4  ;;  %s229_s12 = int_to_ptr.vmem [resolvable:$true] %s228_s12 }
  0x10   :  { %265 = vmatprep.subr.bf16.mxu0 %v315_v6  ;;  %s293_s13 = scalar_lea.vmem %s229_s12, 32  ;;  %p298_p1 = scmp.lt.s32.totalorder %s229_s12, %s229_s12 }
  0x11   :  { %p294_p0 = scmp.ne.s32.totalorder %s229_s12, %s293_s13  ;;  %p299_p2 = scmp.lt.s32.totalorder %s293_s13, %s293_s13 }
  0x12   :  { %60 = vrot.lane.b32.xlu0 %v56_v26, %s319_s29 }
  0x13   :  { %266 = vmatpush3.bf16.msra.mxu0 %v289_v27  ;;  %p300_p3 = por %p299_p2, %p298_p1 }
  0x14   :  { %267 = vmatprep.subr.bf16.mxu0 %v315_v6 }
  0x15   :  { %p301_p4 = pnand %p300_p3, %p294_p0 }
  0x17   :  { %268 = vmatpush3.bf16.msra.mxu0 %v290_v28 }
  0x18   :  { %269 = vmatprep.subr.bf16.mxu0 %v315_v6 }
  0x1b   :  { %270 = vmatpush3.bf16.msra.mxu0 %v291_v29 }
  0x1c   :  { %271 = vmatprep.subr.bf16.mxu0 %v315_v6 }
  0x1f   :  { %272 = vmatpush3.bf16.msra.mxu0 %v292_v30 }
  0x78   :  { %v51_v31 = vpop.permute.xlu1 %50 }
  0x7c   :  { %v45_v32 = vpop.permute.xlu0 %44  ;;  %v53_v33 = vpop.permute.xlu1 %52 }
  0x7d   :  { %v67_v35 = vsel %vm64_vm1, %v344_v0, %v45_v32 }
  0x7e   :  { %v73_v39 = vsel %vm71_vm2, %v67_v35, %v51_v31 }
  0x80   :  { %v47_v34 = vpop.permute.xlu0 %46  ;;  %v63_v37 = vpop.permute.xlu1 %62 }
  0x81   :  { %v70_v36 = vsel %vm64_vm1, %v353_v3, %v47_v34 }
  0x82   :  { %v75_v38 = vsel %vm71_vm2, %v70_v36, %v53_v33 }
  0x83   :  { %v80_v41 = vsel %vm76_vm3, %v75_v38, %v63_v37 }
  0x84   :  { %v61_v40 = vpop.permute.xlu0 %60 }
  0x85   :  { %v78_v42 = vsel %vm76_vm3, %v73_v39, %v61_v40 }
  0x86   :  { %v239_v43 = vcombine.low %v78_v42, %v80_v41 }
  0x88   :  { %274 = vmatmul.mubr.bf16.vlgmr.msra.gmra.mxu0 %v239_v43 }
 0x148   :  { %v192_v45 = vpop.f32.mrf.mxu0 }
 0x149   :  { %v193_v46 = vadd.f32 %v238_v44, %v192_v45 }
 0x14a   :  { %v275_v47 = vpop.f32.mrf.mxu0 }
 0x14b   :  { %v199_v48 = vmax.f32 %v193_v46, 0.0 }
 0x14c   :  { %v195_v49 = vpop.f32.mrf.mxu0 }
 0x14d   :  { %v201_v50 = vsel %vm64_vm1, %v199_v48, -inf  ;;  %v196_v51 = vadd.f32 %v238_v44, %v195_v49 }
 0x14e   :  { %v202_v52 = vrot.slane %v201_v50, 4  ;;  %v276_v53 = vpop.f32.mrf.mxu0 }
 0x14f   :  { %v200_v54 = vmax.f32 %v196_v51, 0.0 }
 0x150   :  { %v203_v55 = vmax.f32 %v201_v50, %v202_v52 }
 0x151   :  { %v208_v56 = vsel %vm64_vm1, %v200_v54, -inf }
 0x152   :  { %v204_v57 = vrot.slane %v203_v55, 2  ;;  %v209_v58 = vrot.slane %v208_v56, 4 }
 0x154   :  { %v205_v59 = vmax.f32 %v203_v55, %v204_v57  ;;  %v210_v60 = vmax.f32 %v208_v56, %v209_v58 }
 0x156   :  { %v211_v61 = vrot.slane %v210_v60, 2  ;;  %v206_v62 = vrot.slane %v205_v59, 1 }
 0x158   :  { %v212_v63 = vmax.f32 %v210_v60, %v211_v61  ;;  %v207_v1 = vmax.f32 %v205_v59, %v206_v62 }
 0x15a   :  { %v213_v0 = vrot.slane %v212_v63, 1 }
 0x15c   :  { %v214_v2 = vmax.f32 %v212_v63, %v213_v0 }
 0x15e   :  { %v218_v3 = vsel %vm217_vm4, %v214_v2, %v207_v1 }
 0x15f   :  { %221 = vst.msk [vmem:[#allocation2] sm:$0x3] %vm220_vm5, %v218_v3 }
 0x160   :  { %304 = shalt.err (!%p301_p4)
}
 0x161   :  { %231 = dma.vmem_to_hbm [thread:$0]  %s229_s12, 32, %s398_s3, [#allocation3]  }
 0x162   :  { %313 = dma.done.wait [#allocation3], 32  }
 0x163   :  { %314 = vsyncadd [#allocation3], 4294967264 }
 0x164   :  { %235 = vsyncpa [#allocation3], 1 }

</bundles_post_ra>
